<compile_context>
chip_gen: v5e
topology: v5e:2x2
jax: 0.10.0
libtpu: 0.0.40
codegen_flags: <defaults>
</compile_context>

<pallas_src>
import math
import functools

import jax
import jax.numpy as jnp
from jax import lax
from jax.experimental import pallas as pl
from jax.experimental.pallas import tpu as pltpu


# Conservative residency threshold: fits alongside the double-buffered pe/out tiles on
# every generation (v5e/v6e 128 MiB VMEM, v7x 64 MiB).
_RESIDENT_TABLE_MAX_BYTES = 16 * 1024 * 1024


def _sublane_multiple(dtype) -> int:
    """Minimum token-tile multiple so (ts, d_model) tiles stay sublane-packing friendly."""
    return {4: 8, 2: 16, 1: 32}.get(jnp.dtype(dtype).itemsize, 8)


def _embed_pe_resident_kernel(ids_ref, pe_ref, emb_ref, out_ref, *, ts, scale):
    """Fast path: full embedding table resident in VMEM.

    ids_ref : SMEM (s_pad,)            int32 token ids (scalar prefetch)
    pe_ref  : VMEM (ts, d_model)       positional-encoding tile for these rows
    emb_ref : VMEM (n_vocab, d_model)  full table (constant block index -> resident)
    out_ref : VMEM (ts, d_model)
    """
    i = pl.program_id(0)
    base = i * ts
    for t in range(ts):  # ts is small and static -> unrolled
        tok = ids_ref[base + t]
        row = emb_ref[pl.ds(tok, 1), :].astype(jnp.float32)
        pe = pe_ref[pl.ds(t, 1), :].astype(jnp.float32)
        out_ref[pl.ds(t, 1), :] = (row * scale + pe).astype(out_ref.dtype)


def _embed_pe_gather_kernel(ids_ref, pe_ref, emb_hbm, out_ref, buf, sems, *, ts, scale):
    """Fallback path: table stays in HBM, rows gathered by manual DMAs that are
    double-buffered across grid steps.

    ids_ref : SMEM (s_pad,)             int32 token ids (scalar prefetch)
    pe_ref  : VMEM (ts, d_model)
    emb_hbm : HBM  (n_vocab, d_model)   full embedding table (pl.ANY)
    out_ref : VMEM (ts, d_model)
    buf     : VMEM (2*ts, d_model)      two row-gather slots
    sems    : DMA semaphores (2,)       one per slot (shared by that slot's ts copies)
    """
    i = pl.program_id(0)
    n = pl.num_programs(0)
    slot = lax.rem(i, 2)

    def issue(tile_idx, slot_idx):
        base = tile_idx * ts
        row0 = slot_idx * ts
        for t in range(ts):
            tok = ids_ref[base + t]
            pltpu.make_async_copy(
                emb_hbm.at[pl.ds(tok, 1)],        # (1, d_model) row in HBM
                buf.at[pl.ds(row0 + t, 1)],       # (1, d_model) row in VMEM scratch
                sems.at[slot_idx],
            ).start()

    # Prime the pipeline with this step's own rows on the first iteration.
    @pl.when(i == 0)
    def _():
        issue(0, 0)

    # Prefetch the next tile's rows into the other slot before waiting on this one.
    @pl.when(i + 1 < n)
    def _():
        issue(i + 1, 1 - slot)

    # Wait for the current slot's ts row copies (per-copy waits on the shared semaphore).
    for t in range(ts):
        pltpu.make_async_copy(
            emb_hbm.at[pl.ds(0, 1)],              # same shape/dtype as the real copy
            buf.at[pl.ds(slot * ts + t, 1)],
            sems.at[slot],
        ).wait()

    row0 = pl.multiple_of(slot * ts, 8)
    rows = buf[pl.ds(row0, ts), :].astype(jnp.float32)
    out_ref[...] = (rows * scale + pe_ref[...].astype(jnp.float32)).astype(out_ref.dtype)


def embedding_with_trainable_pe(ids, emb_table, pe_table, *, ts=None,
                                force_hbm_gather=False):
    """ids: int (seq,), emb_table: (n_vocab, d_model), pe_table: (max_len, d_model)."""
    seq = ids.shape[0]
    n_vocab, d_model = emb_table.shape
    itemsize = jnp.dtype(emb_table.dtype).itemsize
    sub = _sublane_multiple(emb_table.dtype)

    if ts is None:
        # Dtype-aligned token tile, large enough to amortize per-step overhead.
        ts = min(128, max(sub, pl.cdiv(seq, sub) * sub))
        # Keep per-tile buffer demand bounded for very wide models (~6 tiles live).
        while ts > sub and 6 * ts * d_model * itemsize > (16 << 20):
            ts = max(sub, (ts // 2) // sub * sub)
    assert ts % sub == 0, "token tile must be a multiple of the dtype sublane packing"

    s_pad = pl.cdiv(seq, ts) * ts

    # Clamp ids: PyTorch would raise on out-of-range ids; clamping avoids an OOB DMA.
    ids32 = jnp.clip(ids.astype(jnp.int32), 0, n_vocab - 1)
    if s_pad != seq:
        # Padded positions gather row 0 (always in-bounds) and are sliced off below.
        ids32 = jnp.pad(ids32, (0, s_pad - seq))

    pe_in = pe_table
    if pe_table.shape[0] < s_pad:
        # Rare edge case (seq close to max_len): pad only the missing tail rows.
        pe_in = jnp.pad(pe_table, ((0, s_pad - pe_table.shape[0]), (0, 0)))

    scale = math.sqrt(float(d_model))
    table_bytes = n_vocab * d_model * itemsize
    tile_bytes = ts * d_model * itemsize
    resident = (not force_hbm_gather) and table_bytes <= _RESIDENT_TABLE_MAX_BYTES

    if resident:
        kernel = functools.partial(_embed_pe_resident_kernel, ts=ts, scale=scale)
        emb_spec = pl.BlockSpec((n_vocab, d_model), lambda i, ids: (0, 0))
        scratch_shapes = []
        semantics = ("parallel",)
        # Budget 2x for the table in case the pipeline double-buffers it anyway.
        vmem_need = 2 * table_bytes + 4 * tile_bytes
        hbm_bytes = table_bytes + 2 * s_pad * d_model * itemsize + s_pad * 4
    else:
        kernel = functools.partial(_embed_pe_gather_kernel, ts=ts, scale=scale)
        emb_spec = pl.BlockSpec(memory_space=pl.ANY)
        scratch_shapes = [
            pltpu.VMEM((2 * ts, d_model), emb_table.dtype),
            pltpu.SemaphoreType.DMA((2,)),
        ]
        # The cross-step prefetch chain requires sequential iteration on one core.
        semantics = ("arbitrary",)
        vmem_need = 6 * tile_bytes
        hbm_bytes = 3 * s_pad * d_model * itemsize + s_pad * 4

    vmem_limit = int(min(max(vmem_need * 5 // 4 + (2 << 20), 16 << 20), 48 << 20))

    cost = pl.CostEstimate(
        flops=2 * s_pad * d_model,
        transcendentals=0,
        bytes_accessed=int(hbm_bytes),
    )

    out = pl.pallas_call(
        kernel,
        out_shape=jax.ShapeDtypeStruct((s_pad, d_model), emb_table.dtype),
        grid_spec=pltpu.PrefetchScalarGridSpec(
            num_scalar_prefetch=1,
            grid=(s_pad // ts,),
            in_specs=[
                # positional-encoding tile: rows [i*ts, (i+1)*ts)
                pl.BlockSpec((ts, d_model), lambda i, ids: (i, 0)),
                # embedding table: resident VMEM block or raw HBM ref
                emb_spec,
            ],
            out_specs=pl.BlockSpec((ts, d_model), lambda i, ids: (i, 0)),
            scratch_shapes=scratch_shapes,
        ),
        compiler_params=pltpu.CompilerParams(
            dimension_semantics=semantics,
            vmem_limit_bytes=vmem_limit,
        ),
        cost_estimate=cost,
    )(ids32, pe_in, emb_table)

    return out[:seq] if s_pad != seq else out


class EmbeddingWithTrainablePositionalEncoding:
    """JAX/Pallas port (forward only) of the PyTorch module."""

    def __init__(self, d_model: int, n_vocab: int, max_len: int = 5000, key=None):
        self.d_model = d_model
        self.n_vocab = n_vocab
        self.max_len = max_len
        if key is None:
            key = jax.random.PRNGKey(0)
        # nn.Embedding default init: N(0, 1).
        self.embedding = jax.random.normal(key, (n_vocab, d_model), dtype=jnp.float32)
        # Trainable positional table, initialized to zeros as in the PyTorch module.
        self.positional_encodings = jnp.zeros((max_len, d_model), dtype=jnp.float32)

    def __call__(self, x):
        # x: int token ids, shape (seq_len,); leading dim is the sequence axis.
        return embedding_with_trainable_pe(
            x, self.embedding, self.positional_encodings
        )


if __name__ == "__main__":
    key = jax.random.PRNGKey(0)
    k_emb, k_pe, k_ids = jax.random.split(key, 3)

    d_model, n_vocab, max_len, seq = 128, 100, 64, 16

    module = EmbeddingWithTrainablePositionalEncoding(d_model, n_vocab, max_len, key=k_emb)
    # Give the (trainable) positional table non-zero values so the "+ pe" path is exercised.
    module.positional_encodings = 0.02 * jax.random.normal(
        k_pe, (max_len, d_model), dtype=jnp.float32
    )

    x = jax.random.randint(k_ids, (seq,), 0, n_vocab, dtype=jnp.int32)
    ref = module.embedding[x] * math.sqrt(d_model) + module.positional_encodings[:seq]

    # 1) Default path: VMEM-resident table.
    y = jax.block_until_ready(module(x))
    assert y.shape == (seq, d_model), y.shape
    assert jnp.allclose(y, ref, atol=1e-5, rtol=1e-5), float(jnp.max(jnp.abs(y - ref)))

    # 2) Resident path with multiple grid steps + ragged seq (pads + slices).
    seq2 = 20
    x2 = jax.random.randint(jax.random.PRNGKey(3), (seq2,), 0, n_vocab, dtype=jnp.int32)
    ref2 = module.embedding[x2] * math.sqrt(d_model) + module.positional_encodings[:seq2]
    y2 = jax.block_until_ready(
        embedding_with_trainable_pe(x2, module.embedding, module.positional_encodings, ts=8)
    )
    assert y2.shape == (seq2, d_model), y2.shape
    assert jnp.allclose(y2, ref2, atol=1e-5, rtol=1e-5), float(jnp.max(jnp.abs(y2 - ref2)))

    # 3) Large-vocab fallback: HBM table + double-buffered row-gather DMAs (grid of 3
    #    steps so the cross-step prefetch chain is exercised).
    y3 = jax.block_until_ready(
        embedding_with_trainable_pe(
            x2, module.embedding, module.positional_encodings, ts=8, force_hbm_gather=True
        )
    )
    assert y3.shape == (seq2, d_model), y3.shape
    assert jnp.allclose(y3, ref2, atol=1e-5, rtol=1e-5), float(jnp.max(jnp.abs(y3 - ref2)))

    print("KERNEL_OK")
</pallas_src>

<mosaic_0001>
module attributes {stable_mosaic.version = 11 : i64} {
  func.func @_embed_pe_resident_kernel(%arg0: i32, %arg1: memref<16xi32, #tpu.memory_space<smem>>, %arg2: memref<16x128xf32, #tpu.memory_space<vmem>>, %arg3: memref<100x128xf32, #tpu.memory_space<vmem>>, %arg4: memref<16x128xf32, #tpu.memory_space<vmem>>) attributes {dimension_semantics = [#tpu.dimension_semantics<parallel>], iteration_bounds = array<i64: 1>, scalar_prefetch = 1 : i64, scratch_operands = 0 : i64, tpu.core_type = #tpu.core_type<tc>, window_params = [{transform_indices = @transform_0, window_bounds = array<i64: 16, 128>}, {pipeline_mode = #tpu.pipeline_mode<synchronous>, transform_indices = @transform_1, window_bounds = array<i64: 100, 128>}, {transform_indices = @transform_2, window_bounds = array<i64: 16, 128>}]} {
    %c16_i32 = arith.constant 16 : i32
    %0 = arith.muli %arg0, %c16_i32 : i32
    %c0_i32 = arith.constant 0 : i32
    %1 = arith.addi %0, %c0_i32 : i32
    %2 = arith.index_cast %1 : i32 to index
    %3 = memref.load %arg1[%2] : memref<16xi32, #tpu.memory_space<smem>>
    %4 = arith.index_cast %3 : i32 to index
    %c0 = arith.constant 0 : index
    %5 = vector.load %arg3[%4, %c0] : memref<100x128xf32, #tpu.memory_space<vmem>>, vector<1x128xf32>
    %c0_0 = arith.constant 0 : index
    %c0_1 = arith.constant 0 : index
    %6 = vector.load %arg2[%c0_0, %c0_1] : memref<16x128xf32, #tpu.memory_space<vmem>>, vector<1x128xf32>
    %cst = arith.constant 11.3137083 : f32
    %7 = vector.broadcast %cst : f32 to vector<1x128xf32>
    %8 = arith.mulf %5, %7 : vector<1x128xf32>
    %9 = arith.addf %8, %6 : vector<1x128xf32>
    %c0_2 = arith.constant 0 : index
    %c0_3 = arith.constant 0 : index
    %10 = vector.load %arg4[%c0_2, %c0_3] : memref<16x128xf32, #tpu.memory_space<vmem>>, vector<1x128xf32>
    tpu.vector_store %arg4[%c0_2, %c0_3], %9 {strides = array<i32>} : memref<16x128xf32, #tpu.memory_space<vmem>>, vector<1x128xf32>,
    %c1_i32 = arith.constant 1 : i32
    %11 = arith.addi %0, %c1_i32 : i32
    %12 = arith.index_cast %11 : i32 to index
    %13 = memref.load %arg1[%12] : memref<16xi32, #tpu.memory_space<smem>>
    %14 = arith.index_cast %13 : i32 to index
    %c0_4 = arith.constant 0 : index
    %15 = vector.load %arg3[%14, %c0_4] : memref<100x128xf32, #tpu.memory_space<vmem>>, vector<1x128xf32>
    %c1 = arith.constant 1 : index
    %c0_5 = arith.constant 0 : index
    %16 = vector.load %arg2[%c1, %c0_5] : memref<16x128xf32, #tpu.memory_space<vmem>>, vector<1x128xf32>
    %cst_6 = arith.constant 11.3137083 : f32
    %17 = vector.broadcast %cst_6 : f32 to vector<1x128xf32>
    %18 = arith.mulf %15, %17 : vector<1x128xf32>
    %19 = arith.addf %18, %16 : vector<1x128xf32>
    %c1_7 = arith.constant 1 : index
    %c0_8 = arith.constant 0 : index
    %20 = vector.load %arg4[%c1_7, %c0_8] : memref<16x128xf32, #tpu.memory_space<vmem>>, vector<1x128xf32>
    tpu.vector_store %arg4[%c1_7, %c0_8], %19 {strides = array<i32>} : memref<16x128xf32, #tpu.memory_space<vmem>>, vector<1x128xf32>,
    %c2_i32 = arith.constant 2 : i32
    %21 = arith.addi %0, %c2_i32 : i32
    %22 = arith.index_cast %21 : i32 to index
    %23 = memref.load %arg1[%22] : memref<16xi32, #tpu.memory_space<smem>>
    %24 = arith.index_cast %23 : i32 to index
    %c0_9 = arith.constant 0 : index
    %25 = vector.load %arg3[%24, %c0_9] : memref<100x128xf32, #tpu.memory_space<vmem>>, vector<1x128xf32>
    %c2 = arith.constant 2 : index
    %c0_10 = arith.constant 0 : index
    %26 = vector.load %arg2[%c2, %c0_10] : memref<16x128xf32, #tpu.memory_space<vmem>>, vector<1x128xf32>
    %cst_11 = arith.constant 11.3137083 : f32
    %27 = vector.broadcast %cst_11 : f32 to vector<1x128xf32>
    %28 = arith.mulf %25, %27 : vector<1x128xf32>
    %29 = arith.addf %28, %26 : vector<1x128xf32>
    %c2_12 = arith.constant 2 : index
    %c0_13 = arith.constant 0 : index
    %30 = vector.load %arg4[%c2_12, %c0_13] : memref<16x128xf32, #tpu.memory_space<vmem>>, vector<1x128xf32>
    tpu.vector_store %arg4[%c2_12, %c0_13], %29 {strides = array<i32>} : memref<16x128xf32, #tpu.memory_space<vmem>>, vector<1x128xf32>,
    %c3_i32 = arith.constant 3 : i32
    %31 = arith.addi %0, %c3_i32 : i32
    %32 = arith.index_cast %31 : i32 to index
    %33 = memref.load %arg1[%32] : memref<16xi32, #tpu.memory_space<smem>>
    %34 = arith.index_cast %33 : i32 to index
    %c0_14 = arith.constant 0 : index
    %35 = vector.load %arg3[%34, %c0_14] : memref<100x128xf32, #tpu.memory_space<vmem>>, vector<1x128xf32>
    %c3 = arith.constant 3 : index
    %c0_15 = arith.constant 0 : index
    %36 = vector.load %arg2[%c3, %c0_15] : memref<16x128xf32, #tpu.memory_space<vmem>>, vector<1x128xf32>
    %cst_16 = arith.constant 11.3137083 : f32
    %37 = vector.broadcast %cst_16 : f32 to vector<1x128xf32>
    %38 = arith.mulf %35, %37 : vector<1x128xf32>
    %39 = arith.addf %38, %36 : vector<1x128xf32>
    %c3_17 = arith.constant 3 : index
    %c0_18 = arith.constant 0 : index
    %40 = vector.load %arg4[%c3_17, %c0_18] : memref<16x128xf32, #tpu.memory_space<vmem>>, vector<1x128xf32>
    tpu.vector_store %arg4[%c3_17, %c0_18], %39 {strides = array<i32>} : memref<16x128xf32, #tpu.memory_space<vmem>>, vector<1x128xf32>,
    %c4_i32 = arith.constant 4 : i32
    %41 = arith.addi %0, %c4_i32 : i32
    %42 = arith.index_cast %41 : i32 to index
    %43 = memref.load %arg1[%42] : memref<16xi32, #tpu.memory_space<smem>>
    %44 = arith.index_cast %43 : i32 to index
    %c0_19 = arith.constant 0 : index
    %45 = vector.load %arg3[%44, %c0_19] : memref<100x128xf32, #tpu.memory_space<vmem>>, vector<1x128xf32>
    %c4 = arith.constant 4 : index
    %c0_20 = arith.constant 0 : index
    %46 = vector.load %arg2[%c4, %c0_20] : memref<16x128xf32, #tpu.memory_space<vmem>>, vector<1x128xf32>
    %cst_21 = arith.constant 11.3137083 : f32
    %47 = vector.broadcast %cst_21 : f32 to vector<1x128xf32>
    %48 = arith.mulf %45, %47 : vector<1x128xf32>
    %49 = arith.addf %48, %46 : vector<1x128xf32>
    %c4_22 = arith.constant 4 : index
    %c0_23 = arith.constant 0 : index
    %50 = vector.load %arg4[%c4_22, %c0_23] : memref<16x128xf32, #tpu.memory_space<vmem>>, vector<1x128xf32>
    tpu.vector_store %arg4[%c4_22, %c0_23], %49 {strides = array<i32>} : memref<16x128xf32, #tpu.memory_space<vmem>>, vector<1x128xf32>,
    %c5_i32 = arith.constant 5 : i32
    %51 = arith.addi %0, %c5_i32 : i32
    %52 = arith.index_cast %51 : i32 to index
    %53 = memref.load %arg1[%52] : memref<16xi32, #tpu.memory_space<smem>>
    %54 = arith.index_cast %53 : i32 to index
    %c0_24 = arith.constant 0 : index
    %55 = vector.load %arg3[%54, %c0_24] : memref<100x128xf32, #tpu.memory_space<vmem>>, vector<1x128xf32>
    %c5 = arith.constant 5 : index
    %c0_25 = arith.constant 0 : index
    %56 = vector.load %arg2[%c5, %c0_25] : memref<16x128xf32, #tpu.memory_space<vmem>>, vector<1x128xf32>
    %cst_26 = arith.constant 11.3137083 : f32
    %57 = vector.broadcast %cst_26 : f32 to vector<1x128xf32>
    %58 = arith.mulf %55, %57 : vector<1x128xf32>
    %59 = arith.addf %58, %56 : vector<1x128xf32>
    %c5_27 = arith.constant 5 : index
    %c0_28 = arith.constant 0 : index
    %60 = vector.load %arg4[%c5_27, %c0_28] : memref<16x128xf32, #tpu.memory_space<vmem>>, vector<1x128xf32>
    tpu.vector_store %arg4[%c5_27, %c0_28], %59 {strides = array<i32>} : memref<16x128xf32, #tpu.memory_space<vmem>>, vector<1x128xf32>,
    %c6_i32 = arith.constant 6 : i32
    %61 = arith.addi %0, %c6_i32 : i32
    %62 = arith.index_cast %61 : i32 to index
    %63 = memref.load %arg1[%62] : memref<16xi32, #tpu.memory_space<smem>>
    %64 = arith.index_cast %63 : i32 to index
    %c0_29 = arith.constant 0 : index
    %65 = vector.load %arg3[%64, %c0_29] : memref<100x128xf32, #tpu.memory_space<vmem>>, vector<1x128xf32>
    %c6 = arith.constant 6 : index
    %c0_30 = arith.constant 0 : index
    %66 = vector.load %arg2[%c6, %c0_30] : memref<16x128xf32, #tpu.memory_space<vmem>>, vector<1x128xf32>
    %cst_31 = arith.constant 11.3137083 : f32
    %67 = vector.broadcast %cst_31 : f32 to vector<1x128xf32>
    %68 = arith.mulf %65, %67 : vector<1x128xf32>
    %69 = arith.addf %68, %66 : vector<1x128xf32>
    %c6_32 = arith.constant 6 : index
    %c0_33 = arith.constant 0 : index
    %70 = vector.load %arg4[%c6_32, %c0_33] : memref<16x128xf32, #tpu.memory_space<vmem>>, vector<1x128xf32>
    tpu.vector_store %arg4[%c6_32, %c0_33], %69 {strides = array<i32>} : memref<16x128xf32, #tpu.memory_space<vmem>>, vector<1x128xf32>,
    %c7_i32 = arith.constant 7 : i32
    %71 = arith.addi %0, %c7_i32 : i32
    %72 = arith.index_cast %71 : i32 to index
    %73 = memref.load %arg1[%72] : memref<16xi32, #tpu.memory_space<smem>>
    %74 = arith.index_cast %73 : i32 to index
    %c0_34 = arith.constant 0 : index
    %75 = vector.load %arg3[%74, %c0_34] : memref<100x128xf32, #tpu.memory_space<vmem>>, vector<1x128xf32>
    %c7 = arith.constant 7 : index
    %c0_35 = arith.constant 0 : index
    %76 = vector.load %arg2[%c7, %c0_35] : memref<16x128xf32, #tpu.memory_space<vmem>>, vector<1x128xf32>
    %cst_36 = arith.constant 11.3137083 : f32
    %77 = vector.broadcast %cst_36 : f32 to vector<1x128xf32>
    %78 = arith.mulf %75, %77 : vector<1x128xf32>
    %79 = arith.addf %78, %76 : vector<1x128xf32>
    %c7_37 = arith.constant 7 : index
    %c0_38 = arith.constant 0 : index
    %80 = vector.load %arg4[%c7_37, %c0_38] : memref<16x128xf32, #tpu.memory_space<vmem>>, vector<1x128xf32>
    tpu.vector_store %arg4[%c7_37, %c0_38], %79 {strides = array<i32>} : memref<16x128xf32, #tpu.memory_space<vmem>>, vector<1x128xf32>,
    %c8_i32 = arith.constant 8 : i32
    %81 = arith.addi %0, %c8_i32 : i32
    %82 = arith.index_cast %81 : i32 to index
    %83 = memref.load %arg1[%82] : memref<16xi32, #tpu.memory_space<smem>>
    %84 = arith.index_cast %83 : i32 to index
    %c0_39 = arith.constant 0 : index
    %85 = vector.load %arg3[%84, %c0_39] : memref<100x128xf32, #tpu.memory_space<vmem>>, vector<1x128xf32>
    %c8 = arith.constant 8 : index
    %c0_40 = arith.constant 0 : index
    %86 = vector.load %arg2[%c8, %c0_40] : memref<16x128xf32, #tpu.memory_space<vmem>>, vector<1x128xf32>
    %cst_41 = arith.constant 11.3137083 : f32
    %87 = vector.broadcast %cst_41 : f32 to vector<1x128xf32>
    %88 = arith.mulf %85, %87 : vector<1x128xf32>
    %89 = arith.addf %88, %86 : vector<1x128xf32>
    %c8_42 = arith.constant 8 : index
    %c0_43 = arith.constant 0 : index
    %90 = vector.load %arg4[%c8_42, %c0_43] : memref<16x128xf32, #tpu.memory_space<vmem>>, vector<1x128xf32>
    tpu.vector_store %arg4[%c8_42, %c0_43], %89 {strides = array<i32>} : memref<16x128xf32, #tpu.memory_space<vmem>>, vector<1x128xf32>,
    %c9_i32 = arith.constant 9 : i32
    %91 = arith.addi %0, %c9_i32 : i32
    %92 = arith.index_cast %91 : i32 to index
    %93 = memref.load %arg1[%92] : memref<16xi32, #tpu.memory_space<smem>>
    %94 = arith.index_cast %93 : i32 to index
    %c0_44 = arith.constant 0 : index
    %95 = vector.load %arg3[%94, %c0_44] : memref<100x128xf32, #tpu.memory_space<vmem>>, vector<1x128xf32>
    %c9 = arith.constant 9 : index
    %c0_45 = arith.constant 0 : index
    %96 = vector.load %arg2[%c9, %c0_45] : memref<16x128xf32, #tpu.memory_space<vmem>>, vector<1x128xf32>
    %cst_46 = arith.constant 11.3137083 : f32
    %97 = vector.broadcast %cst_46 : f32 to vector<1x128xf32>
    %98 = arith.mulf %95, %97 : vector<1x128xf32>
    %99 = arith.addf %98, %96 : vector<1x128xf32>
    %c9_47 = arith.constant 9 : index
    %c0_48 = arith.constant 0 : index
    %100 = vector.load %arg4[%c9_47, %c0_48] : memref<16x128xf32, #tpu.memory_space<vmem>>, vector<1x128xf32>
    tpu.vector_store %arg4[%c9_47, %c0_48], %99 {strides = array<i32>} : memref<16x128xf32, #tpu.memory_space<vmem>>, vector<1x128xf32>,
    %c10_i32 = arith.constant 10 : i32
    %101 = arith.addi %0, %c10_i32 : i32
    %102 = arith.index_cast %101 : i32 to index
    %103 = memref.load %arg1[%102] : memref<16xi32, #tpu.memory_space<smem>>
    %104 = arith.index_cast %103 : i32 to index
    %c0_49 = arith.constant 0 : index
    %105 = vector.load %arg3[%104, %c0_49] : memref<100x128xf32, #tpu.memory_space<vmem>>, vector<1x128xf32>
    %c10 = arith.constant 10 : index
    %c0_50 = arith.constant 0 : index
    %106 = vector.load %arg2[%c10, %c0_50] : memref<16x128xf32, #tpu.memory_space<vmem>>, vector<1x128xf32>
    %cst_51 = arith.constant 11.3137083 : f32
    %107 = vector.broadcast %cst_51 : f32 to vector<1x128xf32>
    %108 = arith.mulf %105, %107 : vector<1x128xf32>
    %109 = arith.addf %108, %106 : vector<1x128xf32>
    %c10_52 = arith.constant 10 : index
    %c0_53 = arith.constant 0 : index
    %110 = vector.load %arg4[%c10_52, %c0_53] : memref<16x128xf32, #tpu.memory_space<vmem>>, vector<1x128xf32>
    tpu.vector_store %arg4[%c10_52, %c0_53], %109 {strides = array<i32>} : memref<16x128xf32, #tpu.memory_space<vmem>>, vector<1x128xf32>,
    %c11_i32 = arith.constant 11 : i32
    %111 = arith.addi %0, %c11_i32 : i32
    %112 = arith.index_cast %111 : i32 to index
    %113 = memref.load %arg1[%112] : memref<16xi32, #tpu.memory_space<smem>>
    %114 = arith.index_cast %113 : i32 to index
    %c0_54 = arith.constant 0 : index
    %115 = vector.load %arg3[%114, %c0_54] : memref<100x128xf32, #tpu.memory_space<vmem>>, vector<1x128xf32>
    %c11 = arith.constant 11 : index
    %c0_55 = arith.constant 0 : index
    %116 = vector.load %arg2[%c11, %c0_55] : memref<16x128xf32, #tpu.memory_space<vmem>>, vector<1x128xf32>
    %cst_56 = arith.constant 11.3137083 : f32
    %117 = vector.broadcast %cst_56 : f32 to vector<1x128xf32>
    %118 = arith.mulf %115, %117 : vector<1x128xf32>
    %119 = arith.addf %118, %116 : vector<1x128xf32>
    %c11_57 = arith.constant 11 : index
    %c0_58 = arith.constant 0 : index
    %120 = vector.load %arg4[%c11_57, %c0_58] : memref<16x128xf32, #tpu.memory_space<vmem>>, vector<1x128xf32>
    tpu.vector_store %arg4[%c11_57, %c0_58], %119 {strides = array<i32>} : memref<16x128xf32, #tpu.memory_space<vmem>>, vector<1x128xf32>,
    %c12_i32 = arith.constant 12 : i32
    %121 = arith.addi %0, %c12_i32 : i32
    %122 = arith.index_cast %121 : i32 to index
    %123 = memref.load %arg1[%122] : memref<16xi32, #tpu.memory_space<smem>>
    %124 = arith.index_cast %123 : i32 to index
    %c0_59 = arith.constant 0 : index
    %125 = vector.load %arg3[%124, %c0_59] : memref<100x128xf32, #tpu.memory_space<vmem>>, vector<1x128xf32>
    %c12 = arith.constant 12 : index
    %c0_60 = arith.constant 0 : index
    %126 = vector.load %arg2[%c12, %c0_60] : memref<16x128xf32, #tpu.memory_space<vmem>>, vector<1x128xf32>
    %cst_61 = arith.constant 11.3137083 : f32
    %127 = vector.broadcast %cst_61 : f32 to vector<1x128xf32>
    %128 = arith.mulf %125, %127 : vector<1x128xf32>
    %129 = arith.addf %128, %126 : vector<1x128xf32>
    %c12_62 = arith.constant 12 : index
    %c0_63 = arith.constant 0 : index
    %130 = vector.load %arg4[%c12_62, %c0_63] : memref<16x128xf32, #tpu.memory_space<vmem>>, vector<1x128xf32>
    tpu.vector_store %arg4[%c12_62, %c0_63], %129 {strides = array<i32>} : memref<16x128xf32, #tpu.memory_space<vmem>>, vector<1x128xf32>,
    %c13_i32 = arith.constant 13 : i32
    %131 = arith.addi %0, %c13_i32 : i32
    %132 = arith.index_cast %131 : i32 to index
    %133 = memref.load %arg1[%132] : memref<16xi32, #tpu.memory_space<smem>>
    %134 = arith.index_cast %133 : i32 to index
    %c0_64 = arith.constant 0 : index
    %135 = vector.load %arg3[%134, %c0_64] : memref<100x128xf32, #tpu.memory_space<vmem>>, vector<1x128xf32>
    %c13 = arith.constant 13 : index
    %c0_65 = arith.constant 0 : index
    %136 = vector.load %arg2[%c13, %c0_65] : memref<16x128xf32, #tpu.memory_space<vmem>>, vector<1x128xf32>
    %cst_66 = arith.constant 11.3137083 : f32
    %137 = vector.broadcast %cst_66 : f32 to vector<1x128xf32>
    %138 = arith.mulf %135, %137 : vector<1x128xf32>
    %139 = arith.addf %138, %136 : vector<1x128xf32>
    %c13_67 = arith.constant 13 : index
    %c0_68 = arith.constant 0 : index
    %140 = vector.load %arg4[%c13_67, %c0_68] : memref<16x128xf32, #tpu.memory_space<vmem>>, vector<1x128xf32>
    tpu.vector_store %arg4[%c13_67, %c0_68], %139 {strides = array<i32>} : memref<16x128xf32, #tpu.memory_space<vmem>>, vector<1x128xf32>,
    %c14_i32 = arith.constant 14 : i32
    %141 = arith.addi %0, %c14_i32 : i32
    %142 = arith.index_cast %141 : i32 to index
    %143 = memref.load %arg1[%142] : memref<16xi32, #tpu.memory_space<smem>>
    %144 = arith.index_cast %143 : i32 to index
    %c0_69 = arith.constant 0 : index
    %145 = vector.load %arg3[%144, %c0_69] : memref<100x128xf32, #tpu.memory_space<vmem>>, vector<1x128xf32>
    %c14 = arith.constant 14 : index
    %c0_70 = arith.constant 0 : index
    %146 = vector.load %arg2[%c14, %c0_70] : memref<16x128xf32, #tpu.memory_space<vmem>>, vector<1x128xf32>
    %cst_71 = arith.constant 11.3137083 : f32
    %147 = vector.broadcast %cst_71 : f32 to vector<1x128xf32>
    %148 = arith.mulf %145, %147 : vector<1x128xf32>
    %149 = arith.addf %148, %146 : vector<1x128xf32>
    %c14_72 = arith.constant 14 : index
    %c0_73 = arith.constant 0 : index
    %150 = vector.load %arg4[%c14_72, %c0_73] : memref<16x128xf32, #tpu.memory_space<vmem>>, vector<1x128xf32>
    tpu.vector_store %arg4[%c14_72, %c0_73], %149 {strides = array<i32>} : memref<16x128xf32, #tpu.memory_space<vmem>>, vector<1x128xf32>,
    %c15_i32 = arith.constant 15 : i32
    %151 = arith.addi %0, %c15_i32 : i32
    %152 = arith.index_cast %151 : i32 to index
    %153 = memref.load %arg1[%152] : memref<16xi32, #tpu.memory_space<smem>>
    %154 = arith.index_cast %153 : i32 to index
    %c0_74 = arith.constant 0 : index
    %155 = vector.load %arg3[%154, %c0_74] : memref<100x128xf32, #tpu.memory_space<vmem>>, vector<1x128xf32>
    %c15 = arith.constant 15 : index
    %c0_75 = arith.constant 0 : index
    %156 = vector.load %arg2[%c15, %c0_75] : memref<16x128xf32, #tpu.memory_space<vmem>>, vector<1x128xf32>
    %cst_76 = arith.constant 11.3137083 : f32
    %157 = vector.broadcast %cst_76 : f32 to vector<1x128xf32>
    %158 = arith.mulf %155, %157 : vector<1x128xf32>
    %159 = arith.addf %158, %156 : vector<1x128xf32>
    %c15_77 = arith.constant 15 : index
    %c0_78 = arith.constant 0 : index
    %160 = vector.load %arg4[%c15_77, %c0_78] : memref<16x128xf32, #tpu.memory_space<vmem>>, vector<1x128xf32>
    tpu.vector_store %arg4[%c15_77, %c0_78], %159 {strides = array<i32>} : memref<16x128xf32, #tpu.memory_space<vmem>>, vector<1x128xf32>,
    return
  }
  func.func @transform_0(%arg0: i32, %arg1: memref<16xi32, #tpu.memory_space<smem>>) -> (i32, i32) {
    %c0_i32 = arith.constant 0 : i32
    %c0_i32_0 = arith.constant 0 : i32
    return %arg0, %c0_i32 : i32, i32
  }
  func.func @transform_1(%arg0: i32, %arg1: memref<16xi32, #tpu.memory_space<smem>>) -> (i32, i32) {
    %c0_i32 = arith.constant 0 : i32
    %c0_i32_0 = arith.constant 0 : i32
    %c0_i32_1 = arith.constant 0 : i32
    return %c0_i32, %c0_i32_0 : i32, i32
  }
  func.func @transform_2(%arg0: i32, %arg1: memref<16xi32, #tpu.memory_space<smem>>) -> (i32, i32) {
    %c0_i32 = arith.constant 0 : i32
    %c0_i32_0 = arith.constant 0 : i32
    return %arg0, %c0_i32 : i32, i32
  }
}

</mosaic_0001>

<bundles_post_ra>
// kernel: tpu_custom_call.1
= control target key start
LH: loop header
LB: loop body
LE: loop exit
PB: predicated region body
PF: predicated region fallthrough
CT: control target
= control target key end

     0   :  { %s330_s15 = smov [#allocation3]   ;;  %s383_s0 = inlined_call_operand.hbm [shape: s32[16], index: 0, kind: input, shape index: {}]   ;;  %s384_s1 = inlined_call_operand.hbm [shape: f32[64,128], index: 1, kind: input, shape index: {}]   ;;  %s385_s2 = inlined_call_operand.hbm [shape: f32[100,128], index: 2, kind: input, shape index: {}]   ;;  %s386_s3 = inlined_call_operand.hbm [shape: f32[16,128], index: 3, kind: output, shape index: {}]  }
   0x1   :  { %s9_s14 = sshll.u32 %s383_s0, 4  ;;  %s10_s14 = int_to_ptr.hbm [resolvable:$true] %s9_s14 }
   0x2   :  { %12 = dma.hbm_to_smem %s10_s14, 16, %s330_s15, [#allocation2] }
   0x3   :  { %322 = dma.done.wait [#allocation2], 16 }
   0x4   :  { %323 = vsyncadd [#allocation2], 4294967280 }
   0x5   :  { %15 = sfence }
   0x6   :  { %16 = vsyncpa [#allocation5], 0 }
   0x7   :  { %17 = vsyncpa [#allocation8], 0 }
   0x8   :  { %18 = vsyncpa [#allocation6], 0  ;;  %s23_s18 = sshll.u32 %s384_s1, 4  ;;  %s331_s19 = smov [#allocation4]   ;;  %s24_s18 = int_to_ptr.hbm [resolvable:$true] %s23_s18 }
   0x9   :  { %s25_s20 = sshll.u32 %s331_s19, 4  ;;  %s36_s0 = sshll.u32 %s385_s2, 4  ;;  %s26_s20 = int_to_ptr.vmem [resolvable:$true] %s25_s20  ;;  %s37_s0 = int_to_ptr.hbm [resolvable:$true] %s36_s0 }
   0xa   :  { %s332_s23 = smov 128   ;;  %s333_s24 = smov 8  }
   0xb   :  { %31 = dma.hbm_to_vmem [thread:$0]  %s24_s18, 256, %s26_s20, [#allocation5], %s332_s23, %s332_s23, %s333_s24  }
   0xc   :  { %s334_s25 = smov [#allocation7]  }
   0xd   :  { %s38_s26 = sshll.u32 %s334_s25, 4  ;;  %s39_s26 = int_to_ptr.vmem [resolvable:$true] %s38_s26 }
   0xe   :  { %44 = dma.hbm_to_vmem [thread:$0]  %s37_s0, 1664, %s39_s26, [#allocation8], %s332_s23, %s332_s23, %s333_s24  }
   0xf   :  { %324 = dma.done.wait [#allocation5], 256  }
  0x10   :  { %325 = vsyncadd [#allocation5], 4294967040 }
  0x11   :  { %326 = dma.done.wait [#allocation8], 1664  }
  0x12   :  { %327 = vsyncadd [#allocation8], 4294965632  ;;  %s54_s1 = sld [smem:[#allocation3]]  ;;  %v57_v0 = vld [vmem:[#allocation4] sm:$0x1] }
  0x13   :  { %s217_s2 = sld [smem:[#allocation3 + $0x1]]  ;;  %v65_v1 = vld [vmem:[#allocation4 + $0x1] sm:$0x1]  ;;  %v73_v3 = vld [vmem:[#allocation4 + $0x2] sm:$0x1] }
  0x14   :  { %s218_s27 = sld [smem:[#allocation3 + $0x2]]  ;;  %v81_v11 = vld [vmem:[#allocation4 + $0x3] sm:$0x1]  ;;  %v89_v14 = vld [vmem:[#allocation4 + $0x4] sm:$0x1] }
  0x15   :  { %s219_s28 = sld [smem:[#allocation3 + $0x3]]  ;;  %v97_v20 = vld [vmem:[#allocation4 + $0x5] sm:$0x1]  ;;  %v105_v24 = vld [vmem:[#allocation4 + $0x6] sm:$0x1] }
  0x16   :  { %s220_s29 = sld [smem:[#allocation3 + $0x4]]  ;;  %v113_v25 = vld [vmem:[#allocation4 + $0x7] sm:$0x1]  ;;  %v121_v27 = vld [vmem:[#allocation4 + $0x8] sm:$0x1] }
  0x17   :  { %s221_s30 = sld [smem:[#allocation3 + $0x5]]  ;;  %v129_v30 = vld [vmem:[#allocation4 + $0x9] sm:$0x1]  ;;  %v137_v33 = vld [vmem:[#allocation4 + $0xa] sm:$0x1] }
  0x18   :  { %s55_s4 = scalar_lea.vmem [#allocation7], %s54_s1  ;;  %s222_s10 = sld [smem:[#allocation3 + $0x6]]  ;;  %v145_v37 = vld [vmem:[#allocation4 + $0xb] sm:$0x1]  ;;  %v153_v44 = vld [vmem:[#allocation4 + $0xc] sm:$0x1] }
  0x19   :  { %v56_v2 = vld [vmem:[%s55_s4] sm:$0x1]  ;;  %s63_s5 = scalar_lea.vmem [#allocation7], %s217_s2  ;;  %s223_s11 = sld [smem:[#allocation3 + $0x7]]  ;;  %v161_v45 = vld [vmem:[#allocation4 + $0xd] sm:$0x1] }
  0x1a   :  { %v58_v4 = vmul.f32 11.313708, %v56_v2  ;;  %v64_v5 = vld [vmem:[%s63_s5] sm:$0x1]  ;;  %s71_s6 = scalar_lea.vmem [#allocation7], %s218_s27  ;;  %s224_s12 = sld [smem:[#allocation3 + $0x8]] }
  0x1b   :  { %v66_v6 = vmul.f32 11.313708, %v64_v5  ;;  %v72_v7 = vld [vmem:[%s71_s6] sm:$0x1]  ;;  %s79_s7 = scalar_lea.vmem [#allocation7], %s219_s28  ;;  %s225_s13 = sld [smem:[#allocation3 + $0x9]] }
  0x1c   :  { %v59_v8 = vadd.f32 %v58_v4, %v57_v0  ;;  %v74_v9 = vmul.f32 11.313708, %v72_v7  ;;  %v80_v10 = vld [vmem:[%s79_s7] sm:$0x1]  ;;  %s87_s8 = scalar_lea.vmem [#allocation7], %s220_s29  ;;  %s226_s14 = sld [smem:[#allocation3 + $0xa]] }
  0x1d   :  { %v67_v12 = vadd.f32 %v66_v6, %v65_v1  ;;  %v82_v13 = vmul.f32 11.313708, %v80_v10  ;;  %v88_v16 = vld [vmem:[%s87_s8] sm:$0x1]  ;;  %s95_s9 = scalar_lea.vmem [#allocation7], %s221_s30  ;;  %s227_s15 = sld [smem:[#allocation3 + $0xb]] }
  0x1e   :  { %60 = vst [vmem:[#allocation9] sm:$0x1] %v59_v8  ;;  %v75_v15 = vadd.f32 %v74_v9, %v73_v3  ;;  %v96_v17 = vld [vmem:[%s95_s9] sm:$0x1]  ;;  %v90_v19 = vmul.f32 11.313708, %v88_v16 }
  0x1f   :  { %68 = vst [vmem:[#allocation9 + $0x1] sm:$0x1] %v67_v12  ;;  %v83_v18 = vadd.f32 %v82_v13, %v81_v11  ;;  %v98_v21 = vmul.f32 11.313708, %v96_v17  ;;  %s371_s16 = sld [smem:[#allocation3 + $0xc]]  ;;  %s103_s17 = scalar_lea.vmem [#allocation7], %s222_s10 }
  0x20   :  { %76 = vst [vmem:[#allocation9 + $0x2] sm:$0x1] %v75_v15  ;;  %v91_v22 = vadd.f32 %v90_v19, %v89_v14  ;;  %v104_v26 = vld [vmem:[%s103_s17] sm:$0x1]  ;;  %s373_s18 = sld [smem:[#allocation3 + $0xd]]  ;;  %s111_s19 = scalar_lea.vmem [#allocation7], %s223_s11 }
  0x21   :  { %84 = vst [vmem:[#allocation9 + $0x3] sm:$0x1] %v83_v18  ;;  %v99_v23 = vadd.f32 %v98_v21, %v97_v20  ;;  %v106_v28 = vmul.f32 11.313708, %v104_v26  ;;  %v112_v29 = vld [vmem:[%s111_s19] sm:$0x1] }
  0x22   :  { %92 = vst [vmem:[#allocation9 + $0x4] sm:$0x1] %v91_v22  ;;  %v114_v31 = vmul.f32 11.313708, %v112_v29  ;;  %s119_s20 = scalar_lea.vmem [#allocation7], %s224_s12  ;;  %s127_s21 = scalar_lea.vmem [#allocation7], %s225_s13 }
  0x23   :  { %100 = vst [vmem:[#allocation9 + $0x5] sm:$0x1] %v99_v23  ;;  %v120_v32 = vld [vmem:[%s119_s20] sm:$0x1]  ;;  %v107_v34 = vadd.f32 %v106_v28, %v105_v24  ;;  %s135_s22 = scalar_lea.vmem [#allocation7], %s226_s14  ;;  %s143_s0 = scalar_lea.vmem [#allocation7], %s227_s15 }
  0x24   :  { %v122_v35 = vmul.f32 11.313708, %v120_v32  ;;  %v128_v36 = vld [vmem:[%s127_s21] sm:$0x1]  ;;  %v115_v38 = vadd.f32 %v114_v31, %v113_v25  ;;  %s230_s1 = sld [smem:[#allocation3 + $0xe]]  ;;  %s187_s29 = sshll.u32 %s386_s3, 4  ;;  %s188_s29 = int_to_ptr.hbm [resolvable:$true] %s187_s29 }
  0x25   :  { %v130_v39 = vmul.f32 11.313708, %v128_v36  ;;  %v136_v40 = vld [vmem:[%s135_s22] sm:$0x1]  ;;  %108 = vst [vmem:[#allocation9 + $0x6] sm:$0x1] %v107_v34 }
  0x26   :  { %v123_v41 = vadd.f32 %v122_v35, %v121_v27  ;;  %v138_v42 = vmul.f32 11.313708, %v136_v40  ;;  %v144_v43 = vld [vmem:[%s143_s0] sm:$0x1]  ;;  %116 = vst [vmem:[#allocation9 + $0x7] sm:$0x1] %v115_v38 }
  0x27   :  { %v131_v46 = vadd.f32 %v130_v39, %v129_v30  ;;  %v146_v47 = vmul.f32 11.313708, %v144_v43  ;;  %s151_s25 = scalar_lea.vmem [#allocation7], %s371_s16  ;;  %s159_s26 = scalar_lea.vmem [#allocation7], %s373_s18  ;;  %v169_v57 = vld [vmem:[#allocation4 + $0xe] sm:$0x1] }
  0x28   :  { %124 = vst [vmem:[#allocation9 + $0x8] sm:$0x1] %v123_v41  ;;  %v139_v48 = vadd.f32 %v138_v42, %v137_v33  ;;  %v152_v49 = vld [vmem:[%s151_s25] sm:$0x1]  ;;  %s231_s2 = sld [smem:[#allocation3 + $0xf]]  ;;  %s335_s4 = smov [#allocation9]  }
  0x29   :  { %v160_v50 = vld [vmem:[%s159_s26] sm:$0x1]  ;;  %132 = vst [vmem:[#allocation9 + $0x9] sm:$0x1] %v131_v46  ;;  %v147_v51 = vadd.f32 %v146_v47, %v145_v37  ;;  %v154_v52 = vmul.f32 11.313708, %v152_v49 }
  0x2a   :  { %v162_v53 = vmul.f32 11.313708, %v160_v50  ;;  %140 = vst [vmem:[#allocation9 + $0xa] sm:$0x1] %v139_v48  ;;  %s167_s30 = scalar_lea.vmem [#allocation7], %s230_s1  ;;  %s185_s5 = sshll.u32 %s335_s4, 4  ;;  %s186_s5 = int_to_ptr.vmem [resolvable:$true] %s185_s5 }
  0x2b   :  { %148 = vst [vmem:[#allocation9 + $0xb] sm:$0x1] %v147_v51  ;;  %v155_v54 = vadd.f32 %v154_v52, %v153_v44  ;;  %v168_v56 = vld [vmem:[%s167_s30] sm:$0x1]  ;;  %v177_v60 = vld [vmem:[#allocation4 + $0xf] sm:$0x1] }
  0x2c   :  { %v163_v55 = vadd.f32 %v162_v53, %v161_v45  ;;  %v170_v58 = vmul.f32 11.313708, %v168_v56 }
  0x2d   :  { %156 = vst [vmem:[#allocation9 + $0xc] sm:$0x1] %v155_v54 }
  0x2e   :  { %164 = vst [vmem:[#allocation9 + $0xd] sm:$0x1] %v163_v55  ;;  %s175_s6 = scalar_lea.vmem [#allocation7], %s231_s2  ;;  %v171_v62 = vadd.f32 %v170_v58, %v169_v57 }
  0x2f   :  { %v176_v59 = vld [vmem:[%s175_s6] sm:$0x1] }
  0x30   :  { %v178_v61 = vmul.f32 11.313708, %v176_v59  ;;  %172 = vst [vmem:[#allocation9 + $0xe] sm:$0x1] %v171_v62 }
  0x32   :  { %v179_v63 = vadd.f32 %v178_v61, %v177_v60 }
  0x34   :  { %180 = vst [vmem:[#allocation9 + $0xf] sm:$0x1] %v179_v63 }
  0x35   :  { %193 = dma.vmem_to_hbm [thread:$0]  %s186_s5, 256, %s188_s29, [#allocation6], %s332_s23, %s332_s23, %s333_s24  }
  0x36   :  { %328 = dma.done.wait [#allocation6], 256  }
  0x37   :  { %329 = vsyncadd [#allocation6], 4294967040 }
  0x38   :  { %198 = vsyncpa [#allocation5], 1 }
  0x39   :  { %199 = vsyncpa [#allocation8], 1 }
  0x3a   :  { %200 = vsyncpa [#allocation6], 1 }

</bundles_post_ra>
